<compile_context>
chip_gen: v7x
topology: tpu7x:2x2x1
jax: 0.10.0
libtpu: 0.0.40
codegen_flags: <defaults>
</compile_context>

<pallas_src>
import functools

import jax
import jax.numpy as jnp
from jax.experimental import pallas as pl
from jax.experimental.pallas import tpu as pltpu


def _relu_rnn_kernel(T, H, D, O, params_ref, x_ref, len_ref, out_ref, hid_ref):
    """One grid step == one lane-block of B_block sequences (batch in lanes).

    params_ref: SMEM (H*D + H*H + H + O*H + O,) f32 packed as
                [W_ih | W_hh | b_ih + b_hh | W_fc2 | b_fc2]   (row-major)
    x_ref:   VMEM (D*T, Bb)  row d*T + t holds x[:, t, d] for this lane-block
    len_ref: VMEM (1,  Bb)   int32 sequence lengths (lane axis = batch)
    out_ref: VMEM (O*T, Bb)  row o*T + t holds output feature o at step t
    hid_ref: VMEM scratch (H*T, Bb) masked hidden states
    """
    Bb = out_ref.shape[-1]

    # --- unpack scalar weights from SMEM (all indices static) ---------------
    p = 0
    w_ih = [[params_ref[p + i * D + d] for d in range(D)] for i in range(H)]
    p += H * D
    w_hh = [[params_ref[p + i * H + j] for j in range(H)] for i in range(H)]
    p += H * H
    b_rnn = [params_ref[p + i] for i in range(H)]
    p += H
    w2 = [[params_ref[p + o * H + i] for i in range(H)] for o in range(O)]
    p += O * H
    b2 = [params_ref[p + o] for o in range(O)]

    # --- hoisted input projection (VPU): xw[i] = sum_d W_ih[i,d]*x_d + b ----
    xw = []
    for i in range(H):
        acc = w_ih[i][0] * x_ref[pl.ds(0, T), :] + b_rnn[i]
        for d in range(1, D):
            acc = acc + w_ih[i][d] * x_ref[pl.ds(d * T, T), :]
        xw.append(acc)                                           # (T, Bb)

    len_row = len_ref[...]                                       # (1, Bb) int32

    # --- serial ReLU recurrence, h0 = 0; scalar mul-adds on (1, Bb) rows ----
    h = [jnp.zeros((1, Bb), jnp.float32) for _ in range(H)]
    for t in range(T):                                           # static unroll
        mask_t = (len_row > t).astype(jnp.float32)               # (1, Bb)
        new_h = []
        for i in range(H):
            pre = xw[i][t:t + 1, :]
            for j in range(H):
                pre = pre + w_hh[i][j] * h[j]
            new_h.append(jnp.maximum(pre, 0.0))                  # ReLU
        h = new_h
        # pack/pad_packed_sequence: steps past each length produce zeros.
        for i in range(H):
            hid_ref[pl.ds(i * T + t, 1), :] = new_h[i] * mask_t

    # --- fc2 + sigmoid on full slabs; lane-dense contiguous stores ----------
    for o in range(O):
        acc = w2[o][0] * hid_ref[pl.ds(0, T), :] + b2[o]
        for i in range(1, H):
            acc = acc + w2[o][i] * hid_ref[pl.ds(i * T, T), :]
        out_ref[pl.ds(o * T, T), :] = jax.nn.sigmoid(acc)


def vanilla_relu_rnn_forward(x, lengths, params, *, batch_block=128):
    """x: (B, S, input_size) float; lengths: python ints (descending, as
    pack_padded_sequence requires). Returns (B * max(lengths), output_size)."""
    w_ih, w_hh, b_ih, b_hh, w2, b2 = params
    B, S, D = x.shape
    H = w_ih.shape[0]
    O = w2.shape[0]
    T = int(max(int(l) for l in lengths))   # pad_packed_sequence pads to max(length)

    x = jnp.asarray(x, jnp.float32)[:, :T, :]

    # Batch in lanes: pad B up to a multiple of the 128-lane block.  Padding
    # lanes carry zeros + length 0, mask to zero, and are sliced off below.
    Bb = batch_block
    B_pad = max(Bb, pl.cdiv(B, Bb) * Bb)

    # (B, T, D) -> (D*T, B_pad): row d*T + t = x[:, t, d]   (lane axis = batch)
    x_slab = jnp.transpose(x, (2, 1, 0)).reshape(D * T, B)
    x_slab = jnp.pad(x_slab, ((0, 0), (0, B_pad - B)))

    len_row = jnp.zeros((1, B_pad), jnp.int32).at[0, :B].set(
        jnp.asarray(lengths, jnp.int32))

    # All weights/biases packed into one tiny SMEM array (scalar reads in-kernel).
    packed = jnp.concatenate([
        jnp.asarray(w_ih, jnp.float32).reshape(-1),
        jnp.asarray(w_hh, jnp.float32).reshape(-1),
        (jnp.asarray(b_ih, jnp.float32) + jnp.asarray(b_hh, jnp.float32)).reshape(-1),
        jnp.asarray(w2, jnp.float32).reshape(-1),
        jnp.asarray(b2, jnp.float32).reshape(-1),
    ])

    grid = (B_pad // Bb,)
    # NOTE(v7x): with a tiny batch this is a single grid step (one TensorCore);
    # larger batches give multiple "parallel" blocks that shard across cores.
    # VMEM per step is a few KiB, far under every generation's scoped limit.
    out_2d = pl.pallas_call(
        functools.partial(_relu_rnn_kernel, T, H, D, O),
        grid=grid,
        out_shape=jax.ShapeDtypeStruct((O * T, B_pad), jnp.float32),
        in_specs=[
            pl.BlockSpec(memory_space=pltpu.MemorySpace.SMEM),    # packed params
            pl.BlockSpec((D * T, Bb), lambda b: (0, b)),          # x slab
            pl.BlockSpec((1, Bb), lambda b: (0, b)),              # lengths row
        ],
        out_specs=pl.BlockSpec((O * T, Bb), lambda b: (0, b)),
        scratch_shapes=[pltpu.VMEM((H * T, Bb), jnp.float32)],
        compiler_params=pltpu.CompilerParams(
            dimension_semantics=("parallel",)),
    )(packed, x_slab, len_row)

    # (O*T, B_pad) -> (B, T, O) -> (B*T, O)   == .view(-1, output_size)
    out = out_2d.reshape(O, T, B_pad)[:, :, :B]
    return jnp.transpose(out, (2, 1, 0)).reshape(B * T, O)


def _reference(x, lengths, params):
    """Pure-JAX reference mirroring the PyTorch forward semantics."""
    w_ih, w_hh, b_ih, b_hh, w2, b2 = params
    B, S, D = x.shape
    H = w_ih.shape[0]
    T = int(max(int(l) for l in lengths))
    x = x[:, :T, :]
    h = jnp.zeros((B, H), jnp.float32)
    outs = []
    for t in range(T):
        h = jax.nn.relu(x[:, t, :] @ w_ih.T + b_ih + h @ w_hh.T + b_hh)
        outs.append(h)
    hidden = jnp.stack(outs, axis=1)                              # (B, T, H)
    mask = (jnp.arange(T)[None, :] <
            jnp.asarray(lengths)[:, None]).astype(jnp.float32)
    hidden = hidden * mask[:, :, None]                            # pad_packed_sequence
    flat = hidden.reshape(B * T, H)
    return jax.nn.sigmoid(flat @ w2.T + b2)


if __name__ == "__main__":
    # Sizes implied by the module's hard-coded weights.
    batch, seq = 2, 8
    input_size, hidden_size, output_size = 2, 1, 2

    w_ih = jnp.asarray([[1.0, -1.0]], jnp.float32)        # rnn.weight_ih_l0
    w_hh = jnp.asarray([[1.0]], jnp.float32)              # rnn.weight_hh_l0
    w2 = jnp.asarray([[1.0], [1.0]], jnp.float32)         # fc2.weight
    b2 = jnp.asarray([1.0, -0.5], jnp.float32)            # fc2.bias

    # Actual RNN biases keep nn.RNN's default random init (see header note).
    key = jax.random.PRNGKey(0)
    k_x, k_bi, k_bh = jax.random.split(key, 3)
    s = 1.0 / (hidden_size ** 0.5)
    b_ih = jax.random.uniform(k_bi, (hidden_size,), jnp.float32, -s, s)
    b_hh = jax.random.uniform(k_bh, (hidden_size,), jnp.float32, -s, s)
    params = (w_ih, w_hh, b_ih, b_hh, w2, b2)

    x = jax.random.normal(k_x, (batch, seq, input_size), jnp.float32)
    lengths = [8, 6]       # descending, as pack_padded_sequence requires

    out = vanilla_relu_rnn_forward(x, lengths, params)
    out = jax.block_until_ready(out)

    ref = _reference(x, lengths, params)
    assert out.shape == (batch * max(lengths), output_size)
    assert jnp.allclose(out, ref, atol=1e-5, rtol=1e-5), "mismatch vs JAX reference"

    print("KERNEL_OK")
</pallas_src>

<mosaic_0001>
module attributes {stable_mosaic.version = 11 : i64} {
  func.func @_relu_rnn_kernel(%arg0: i32, %arg1: memref<8xf32, #tpu.memory_space<smem>>, %arg2: memref<16x128xf32, #tpu.memory_space<vmem>>, %arg3: memref<1x128xi32, #tpu.memory_space<vmem>>, %arg4: memref<16x128xf32, #tpu.memory_space<vmem>>, %arg5: memref<8x128xf32, #tpu.memory_space<vmem>>) attributes {dimension_semantics = [#tpu.dimension_semantics<parallel>], iteration_bounds = array<i64: 1>, scalar_prefetch = 0 : i64, scratch_operands = 1 : i64, tpu.core_type = #tpu.core_type<tc>, window_params = [{transform_indices = @transform_0, window_bounds = array<i64: 8>}, {transform_indices = @transform_1, window_bounds = array<i64: 16, 128>}, {transform_indices = @transform_2, window_bounds = array<i64: 1, 128>}, {transform_indices = @transform_3, window_bounds = array<i64: 16, 128>}]} {
    %c0 = arith.constant 0 : index
    %0 = memref.load %arg1[%c0] : memref<8xf32, #tpu.memory_space<smem>>
    %c1 = arith.constant 1 : index
    %1 = memref.load %arg1[%c1] : memref<8xf32, #tpu.memory_space<smem>>
    %c2 = arith.constant 2 : index
    %2 = memref.load %arg1[%c2] : memref<8xf32, #tpu.memory_space<smem>>
    %c3 = arith.constant 3 : index
    %3 = memref.load %arg1[%c3] : memref<8xf32, #tpu.memory_space<smem>>
    %c4 = arith.constant 4 : index
    %4 = memref.load %arg1[%c4] : memref<8xf32, #tpu.memory_space<smem>>
    %c5 = arith.constant 5 : index
    %5 = memref.load %arg1[%c5] : memref<8xf32, #tpu.memory_space<smem>>
    %c6 = arith.constant 6 : index
    %6 = memref.load %arg1[%c6] : memref<8xf32, #tpu.memory_space<smem>>
    %c7 = arith.constant 7 : index
    %7 = memref.load %arg1[%c7] : memref<8xf32, #tpu.memory_space<smem>>
    %c0_0 = arith.constant 0 : index
    %c0_1 = arith.constant 0 : index
    %8 = vector.load %arg2[%c0_0, %c0_1] : memref<16x128xf32, #tpu.memory_space<vmem>>, vector<8x128xf32>
    %9 = vector.broadcast %0 : f32 to vector<8x128xf32>
    %10 = arith.mulf %9, %8 : vector<8x128xf32>
    %11 = vector.broadcast %3 : f32 to vector<8x128xf32>
    %12 = arith.addf %10, %11 : vector<8x128xf32>
    %c8 = arith.constant 8 : index
    %c0_2 = arith.constant 0 : index
    %13 = vector.load %arg2[%c8, %c0_2] : memref<16x128xf32, #tpu.memory_space<vmem>>, vector<8x128xf32>
    %14 = vector.broadcast %1 : f32 to vector<8x128xf32>
    %15 = arith.mulf %14, %13 : vector<8x128xf32>
    %16 = arith.addf %12, %15 : vector<8x128xf32>
    %c0_3 = arith.constant 0 : index
    %c0_4 = arith.constant 0 : index
    %17 = vector.load %arg3[%c0_3, %c0_4] : memref<1x128xi32, #tpu.memory_space<vmem>>, vector<1x128xi32>
    %cst = arith.constant 0.000000e+00 : f32
    %18 = vector.broadcast %cst : f32 to vector<1x128xf32>
    %c0_i32 = arith.constant 0 : i32
    %19 = vector.broadcast %c0_i32 : i32 to vector<1x128xi32>
    %20 = arith.cmpi sgt, %17, %19 : vector<1x128xi32>
    %21 = arith.extui %20 : vector<1x128xi1> to vector<1x128xi32>
    %22 = arith.sitofp %21 : vector<1x128xi32> to vector<1x128xf32>
    %23 = vector.extract_strided_slice %16 {offsets = [0, 0], sizes = [1, 128], strides = [1, 1]} : vector<8x128xf32> to vector<1x128xf32>
    %24 = vector.broadcast %2 : f32 to vector<1x128xf32>
    %25 = arith.mulf %24, %18 : vector<1x128xf32>
    %26 = arith.addf %23, %25 : vector<1x128xf32>
    %cst_5 = arith.constant 0.000000e+00 : f32
    %27 = vector.broadcast %cst_5 : f32 to vector<1x128xf32>
    %28 = arith.maximumf %26, %27 : vector<1x128xf32>
    %29 = arith.mulf %28, %22 : vector<1x128xf32>
    %c0_6 = arith.constant 0 : index
    %c0_7 = arith.constant 0 : index
    %30 = vector.load %arg5[%c0_6, %c0_7] : memref<8x128xf32, #tpu.memory_space<vmem>>, vector<1x128xf32>
    tpu.vector_store %arg5[%c0_6, %c0_7], %29 {strides = array<i32>} : memref<8x128xf32, #tpu.memory_space<vmem>>, vector<1x128xf32>,
    %c1_i32 = arith.constant 1 : i32
    %31 = vector.broadcast %c1_i32 : i32 to vector<1x128xi32>
    %32 = arith.cmpi sgt, %17, %31 : vector<1x128xi32>
    %33 = arith.extui %32 : vector<1x128xi1> to vector<1x128xi32>
    %34 = arith.sitofp %33 : vector<1x128xi32> to vector<1x128xf32>
    %35 = vector.extract_strided_slice %16 {offsets = [1, 0], sizes = [1, 128], strides = [1, 1]} : vector<8x128xf32> to vector<1x128xf32>
    %36 = vector.broadcast %2 : f32 to vector<1x128xf32>
    %37 = arith.mulf %36, %28 : vector<1x128xf32>
    %38 = arith.addf %35, %37 : vector<1x128xf32>
    %cst_8 = arith.constant 0.000000e+00 : f32
    %39 = vector.broadcast %cst_8 : f32 to vector<1x128xf32>
    %40 = arith.maximumf %38, %39 : vector<1x128xf32>
    %41 = arith.mulf %40, %34 : vector<1x128xf32>
    %c1_9 = arith.constant 1 : index
    %c0_10 = arith.constant 0 : index
    %42 = vector.load %arg5[%c1_9, %c0_10] : memref<8x128xf32, #tpu.memory_space<vmem>>, vector<1x128xf32>
    tpu.vector_store %arg5[%c1_9, %c0_10], %41 {strides = array<i32>} : memref<8x128xf32, #tpu.memory_space<vmem>>, vector<1x128xf32>,
    %c2_i32 = arith.constant 2 : i32
    %43 = vector.broadcast %c2_i32 : i32 to vector<1x128xi32>
    %44 = arith.cmpi sgt, %17, %43 : vector<1x128xi32>
    %45 = arith.extui %44 : vector<1x128xi1> to vector<1x128xi32>
    %46 = arith.sitofp %45 : vector<1x128xi32> to vector<1x128xf32>
    %47 = vector.extract_strided_slice %16 {offsets = [2, 0], sizes = [1, 128], strides = [1, 1]} : vector<8x128xf32> to vector<1x128xf32>
    %48 = vector.broadcast %2 : f32 to vector<1x128xf32>
    %49 = arith.mulf %48, %40 : vector<1x128xf32>
    %50 = arith.addf %47, %49 : vector<1x128xf32>
    %cst_11 = arith.constant 0.000000e+00 : f32
    %51 = vector.broadcast %cst_11 : f32 to vector<1x128xf32>
    %52 = arith.maximumf %50, %51 : vector<1x128xf32>
    %53 = arith.mulf %52, %46 : vector<1x128xf32>
    %c2_12 = arith.constant 2 : index
    %c0_13 = arith.constant 0 : index
    %54 = vector.load %arg5[%c2_12, %c0_13] : memref<8x128xf32, #tpu.memory_space<vmem>>, vector<1x128xf32>
    tpu.vector_store %arg5[%c2_12, %c0_13], %53 {strides = array<i32>} : memref<8x128xf32, #tpu.memory_space<vmem>>, vector<1x128xf32>,
    %c3_i32 = arith.constant 3 : i32
    %55 = vector.broadcast %c3_i32 : i32 to vector<1x128xi32>
    %56 = arith.cmpi sgt, %17, %55 : vector<1x128xi32>
    %57 = arith.extui %56 : vector<1x128xi1> to vector<1x128xi32>
    %58 = arith.sitofp %57 : vector<1x128xi32> to vector<1x128xf32>
    %59 = vector.extract_strided_slice %16 {offsets = [3, 0], sizes = [1, 128], strides = [1, 1]} : vector<8x128xf32> to vector<1x128xf32>
    %60 = vector.broadcast %2 : f32 to vector<1x128xf32>
    %61 = arith.mulf %60, %52 : vector<1x128xf32>
    %62 = arith.addf %59, %61 : vector<1x128xf32>
    %cst_14 = arith.constant 0.000000e+00 : f32
    %63 = vector.broadcast %cst_14 : f32 to vector<1x128xf32>
    %64 = arith.maximumf %62, %63 : vector<1x128xf32>
    %65 = arith.mulf %64, %58 : vector<1x128xf32>
    %c3_15 = arith.constant 3 : index
    %c0_16 = arith.constant 0 : index
    %66 = vector.load %arg5[%c3_15, %c0_16] : memref<8x128xf32, #tpu.memory_space<vmem>>, vector<1x128xf32>
    tpu.vector_store %arg5[%c3_15, %c0_16], %65 {strides = array<i32>} : memref<8x128xf32, #tpu.memory_space<vmem>>, vector<1x128xf32>,
    %c4_i32 = arith.constant 4 : i32
    %67 = vector.broadcast %c4_i32 : i32 to vector<1x128xi32>
    %68 = arith.cmpi sgt, %17, %67 : vector<1x128xi32>
    %69 = arith.extui %68 : vector<1x128xi1> to vector<1x128xi32>
    %70 = arith.sitofp %69 : vector<1x128xi32> to vector<1x128xf32>
    %71 = vector.extract_strided_slice %16 {offsets = [4, 0], sizes = [1, 128], strides = [1, 1]} : vector<8x128xf32> to vector<1x128xf32>
    %72 = vector.broadcast %2 : f32 to vector<1x128xf32>
    %73 = arith.mulf %72, %64 : vector<1x128xf32>
    %74 = arith.addf %71, %73 : vector<1x128xf32>
    %cst_17 = arith.constant 0.000000e+00 : f32
    %75 = vector.broadcast %cst_17 : f32 to vector<1x128xf32>
    %76 = arith.maximumf %74, %75 : vector<1x128xf32>
    %77 = arith.mulf %76, %70 : vector<1x128xf32>
    %c4_18 = arith.constant 4 : index
    %c0_19 = arith.constant 0 : index
    %78 = vector.load %arg5[%c4_18, %c0_19] : memref<8x128xf32, #tpu.memory_space<vmem>>, vector<1x128xf32>
    tpu.vector_store %arg5[%c4_18, %c0_19], %77 {strides = array<i32>} : memref<8x128xf32, #tpu.memory_space<vmem>>, vector<1x128xf32>,
    %c5_i32 = arith.constant 5 : i32
    %79 = vector.broadcast %c5_i32 : i32 to vector<1x128xi32>
    %80 = arith.cmpi sgt, %17, %79 : vector<1x128xi32>
    %81 = arith.extui %80 : vector<1x128xi1> to vector<1x128xi32>
    %82 = arith.sitofp %81 : vector<1x128xi32> to vector<1x128xf32>
    %83 = vector.extract_strided_slice %16 {offsets = [5, 0], sizes = [1, 128], strides = [1, 1]} : vector<8x128xf32> to vector<1x128xf32>
    %84 = vector.broadcast %2 : f32 to vector<1x128xf32>
    %85 = arith.mulf %84, %76 : vector<1x128xf32>
    %86 = arith.addf %83, %85 : vector<1x128xf32>
    %cst_20 = arith.constant 0.000000e+00 : f32
    %87 = vector.broadcast %cst_20 : f32 to vector<1x128xf32>
    %88 = arith.maximumf %86, %87 : vector<1x128xf32>
    %89 = arith.mulf %88, %82 : vector<1x128xf32>
    %c5_21 = arith.constant 5 : index
    %c0_22 = arith.constant 0 : index
    %90 = vector.load %arg5[%c5_21, %c0_22] : memref<8x128xf32, #tpu.memory_space<vmem>>, vector<1x128xf32>
    tpu.vector_store %arg5[%c5_21, %c0_22], %89 {strides = array<i32>} : memref<8x128xf32, #tpu.memory_space<vmem>>, vector<1x128xf32>,
    %c6_i32 = arith.constant 6 : i32
    %91 = vector.broadcast %c6_i32 : i32 to vector<1x128xi32>
    %92 = arith.cmpi sgt, %17, %91 : vector<1x128xi32>
    %93 = arith.extui %92 : vector<1x128xi1> to vector<1x128xi32>
    %94 = arith.sitofp %93 : vector<1x128xi32> to vector<1x128xf32>
    %95 = vector.extract_strided_slice %16 {offsets = [6, 0], sizes = [1, 128], strides = [1, 1]} : vector<8x128xf32> to vector<1x128xf32>
    %96 = vector.broadcast %2 : f32 to vector<1x128xf32>
    %97 = arith.mulf %96, %88 : vector<1x128xf32>
    %98 = arith.addf %95, %97 : vector<1x128xf32>
    %cst_23 = arith.constant 0.000000e+00 : f32
    %99 = vector.broadcast %cst_23 : f32 to vector<1x128xf32>
    %100 = arith.maximumf %98, %99 : vector<1x128xf32>
    %101 = arith.mulf %100, %94 : vector<1x128xf32>
    %c6_24 = arith.constant 6 : index
    %c0_25 = arith.constant 0 : index
    %102 = vector.load %arg5[%c6_24, %c0_25] : memref<8x128xf32, #tpu.memory_space<vmem>>, vector<1x128xf32>
    tpu.vector_store %arg5[%c6_24, %c0_25], %101 {strides = array<i32>} : memref<8x128xf32, #tpu.memory_space<vmem>>, vector<1x128xf32>,
    %c7_i32 = arith.constant 7 : i32
    %103 = vector.broadcast %c7_i32 : i32 to vector<1x128xi32>
    %104 = arith.cmpi sgt, %17, %103 : vector<1x128xi32>
    %105 = arith.extui %104 : vector<1x128xi1> to vector<1x128xi32>
    %106 = arith.sitofp %105 : vector<1x128xi32> to vector<1x128xf32>
    %107 = vector.extract_strided_slice %16 {offsets = [7, 0], sizes = [1, 128], strides = [1, 1]} : vector<8x128xf32> to vector<1x128xf32>
    %108 = vector.broadcast %2 : f32 to vector<1x128xf32>
    %109 = arith.mulf %108, %100 : vector<1x128xf32>
    %110 = arith.addf %107, %109 : vector<1x128xf32>
    %cst_26 = arith.constant 0.000000e+00 : f32
    %111 = vector.broadcast %cst_26 : f32 to vector<1x128xf32>
    %112 = arith.maximumf %110, %111 : vector<1x128xf32>
    %113 = arith.mulf %112, %106 : vector<1x128xf32>
    %c7_27 = arith.constant 7 : index
    %c0_28 = arith.constant 0 : index
    %114 = vector.load %arg5[%c7_27, %c0_28] : memref<8x128xf32, #tpu.memory_space<vmem>>, vector<1x128xf32>
    tpu.vector_store %arg5[%c7_27, %c0_28], %113 {strides = array<i32>} : memref<8x128xf32, #tpu.memory_space<vmem>>, vector<1x128xf32>,
    %c0_29 = arith.constant 0 : index
    %c0_30 = arith.constant 0 : index
    %115 = vector.load %arg5[%c0_29, %c0_30] : memref<8x128xf32, #tpu.memory_space<vmem>>, vector<8x128xf32>
    %116 = vector.broadcast %4 : f32 to vector<8x128xf32>
    %117 = arith.mulf %116, %115 : vector<8x128xf32>
    %118 = vector.broadcast %6 : f32 to vector<8x128xf32>
    %119 = arith.addf %117, %118 : vector<8x128xf32>
    %120 = arith.negf %119 : vector<8x128xf32>
    %121 = math.exp %120 : vector<8x128xf32>
    %cst_31 = arith.constant 1.000000e+00 : f32
    %122 = vector.broadcast %cst_31 : f32 to vector<8x128xf32>
    %123 = arith.addf %122, %121 : vector<8x128xf32>
    %124 = arith.divf %122, %123 : vector<8x128xf32>
    %c0_32 = arith.constant 0 : index
    %c0_33 = arith.constant 0 : index
    %125 = vector.load %arg4[%c0_32, %c0_33] : memref<16x128xf32, #tpu.memory_space<vmem>>, vector<8x128xf32>
    tpu.vector_store %arg4[%c0_32, %c0_33], %124 {strides = array<i32>} : memref<16x128xf32, #tpu.memory_space<vmem>>, vector<8x128xf32>,
    %c0_34 = arith.constant 0 : index
    %c0_35 = arith.constant 0 : index
    %126 = vector.load %arg5[%c0_34, %c0_35] : memref<8x128xf32, #tpu.memory_space<vmem>>, vector<8x128xf32>
    %127 = vector.broadcast %5 : f32 to vector<8x128xf32>
    %128 = arith.mulf %127, %126 : vector<8x128xf32>
    %129 = vector.broadcast %7 : f32 to vector<8x128xf32>
    %130 = arith.addf %128, %129 : vector<8x128xf32>
    %131 = arith.negf %130 : vector<8x128xf32>
    %132 = math.exp %131 : vector<8x128xf32>
    %cst_36 = arith.constant 1.000000e+00 : f32
    %133 = vector.broadcast %cst_36 : f32 to vector<8x128xf32>
    %134 = arith.addf %133, %132 : vector<8x128xf32>
    %135 = arith.divf %133, %134 : vector<8x128xf32>
    %c8_37 = arith.constant 8 : index
    %c0_38 = arith.constant 0 : index
    %136 = vector.load %arg4[%c8_37, %c0_38] : memref<16x128xf32, #tpu.memory_space<vmem>>, vector<8x128xf32>
    tpu.vector_store %arg4[%c8_37, %c0_38], %135 {strides = array<i32>} : memref<16x128xf32, #tpu.memory_space<vmem>>, vector<8x128xf32>,
    return
  }
  func.func @transform_0(%arg0: i32) -> i32 {
    %c0_i32 = arith.constant 0 : i32
    %c0_i32_0 = arith.constant 0 : i32
    return %c0_i32 : i32
  }
  func.func @transform_1(%arg0: i32) -> (i32, i32) {
    %c0_i32 = arith.constant 0 : i32
    %c0_i32_0 = arith.constant 0 : i32
    return %c0_i32, %arg0 : i32, i32
  }
  func.func @transform_2(%arg0: i32) -> (i32, i32) {
    %c0_i32 = arith.constant 0 : i32
    %c0_i32_0 = arith.constant 0 : i32
    return %c0_i32, %arg0 : i32, i32
  }
  func.func @transform_3(%arg0: i32) -> (i32, i32) {
    %c0_i32 = arith.constant 0 : i32
    %c0_i32_0 = arith.constant 0 : i32
    return %c0_i32, %arg0 : i32, i32
  }
}

</mosaic_0001>

<bundles_post_ra>
// kernel: tpu_custom_call.1
= control target key start
LH: loop header
LB: loop body
LE: loop exit
PB: predicated region body
PF: predicated region fallthrough
CT: control target
= control target key end

     0   :  { %8 = vsyncpa [#allocation6], 0  ;;  %s429_s0 = inlined_call_operand.hbm [shape: f32[8], index: 0, kind: input, shape index: {}]   ;;  %s430_s1 = inlined_call_operand.hbm [shape: f32[16,128], index: 1, kind: input, shape index: {}]   ;;  %s431_s2 = inlined_call_operand.vmem [shape: s32[1,128], index: 2, kind: input, shape index: {}]   ;;  %s432_s3 = inlined_call_operand.hbm [shape: f32[16,128], index: 3, kind: output, shape index: {}]  }
   0x1   :  { %9 = vsyncpa [#allocation4], 0 }
   0x2   :  { %10 = vsyncpa [#allocation5], 0  ;;  %s259_s14 = scalar_lea.hbm %s429_s0, 16 }
   0x3   :  { %p260_p0 = scmp.ne.s32.totalorder %s429_s0, %s259_s14  ;;  %p263_p1 = scmp.lt.u32.totalorder %s259_s14, %s429_s0 }
   0x5   :  { %p265_p2 = pnand %p263_p1, %p260_p0 }
   0x7   :  { %268 = shalt.err (!%p265_p2)
}
   0x8   :  { %s319_s19 = smov [#allocation3]   ;;  %s320_s22 = smov [#allocation7]  }
   0x9   :  { %18 = dma.hbm_to_smem %s429_s0, 16, %s319_s19, [#allocation6]  }
   0xa   :  { %s24_s23 = sshll.u32 %s320_s22, 4  ;;  %s269_s26 = scalar_lea.hbm %s430_s1, 256  ;;  %s25_s23 = int_to_ptr.vmem [resolvable:$true] %s24_s23 }
   0xb   :  { %p270_p3 = scmp.ne.s32.totalorder %s430_s1, %s269_s26  ;;  %p273_p4 = scmp.lt.u32.totalorder %s269_s26, %s430_s1 }
   0xd   :  { %p275_p5 = pnand %p273_p4, %p270_p3 }
   0xf   :  { %278 = shalt.err (!%p275_p5)
}
  0x10   :  { %s279_s4 = scalar_lea.vmem %s25_s23, 256  ;;  %p284_p7 = scmp.lt.s32.totalorder %s25_s23, %s25_s23 }
  0x11   :  { %p280_p6 = scmp.ne.s32.totalorder %s25_s23, %s279_s4  ;;  %p285_p8 = scmp.lt.s32.totalorder %s279_s4, %s279_s4 }
  0x13   :  { %p286_p9 = por %p285_p8, %p284_p7 }
  0x15   :  { %p287_p10 = pnand %p286_p9, %p280_p6 }
  0x17   :  { %290 = shalt.err (!%p287_p10)
}
  0x18   :  { %s321_s0 = smov 128   ;;  %s322_s5 = smov 8  }
  0x19   :  { %30 = dma.hbm_to_vmem [thread:$0]  %s430_s1, 256, %s25_s23, [#allocation4], %s321_s0, %s321_s0, %s322_s5  }
  0x1a   :  { %313 = dma.done.wait [#allocation6], 16  }
  0x1b   :  { %314 = vsyncadd [#allocation6], 4294967280 }
  0x1c   :  { %315 = dma.done.wait [#allocation4], 256  }
  0x1d   :  { %316 = vsyncadd [#allocation4], 4294967040 }
  0x1e   :  { %39 = sfence }
  0x1f   :  { %s40_s8 = sld [smem:[#allocation3]]  ;;  %s228_s9 = sld [smem:[#allocation3 + $0x1]]  ;;  %v48_v0 = vld [vmem:[#allocation7] sm:$0xff]  ;;  %v53_v1 = vld [vmem:[#allocation7 + $0x8] sm:$0xff]  ;;  %v77_v10 = vlaneseq  ;;  %v378_v11 = vld [vmem:[%s431_s2] sm:$0x1] }
  0x20   :  { %s229_s10 = sld [smem:[#allocation3 + $0x2]]  ;;  %s230_s11 = sld [smem:[#allocation3 + $0x3]]  ;;  %vm58_vm0 = vcmp.gt.s32.totalorder %v378_v11, 0  ;;  %v323_v15 = vmov 0.0   ;;  %vm67_vm1 = vcmp.gt.s32.totalorder %v378_v11, 1  ;;  %vm84_vm2 = vcmp.gt.s32.totalorder %v378_v11, 2 }
  0x21   :  { %v78_v14 = vshrl.u32 %v77_v10, 7  ;;  %v235_v16 = vsel %vm58_vm0, 1.0, %v323_v15  ;;  %v236_v21 = vsel %vm67_vm1, 1.0, %v323_v15  ;;  %v237_v28 = vsel %vm84_vm2, 1.0, %v323_v15  ;;  %s231_s2 = sld [smem:[#allocation3 + $0x4]]  ;;  %s232_s13 = sld [smem:[#allocation3 + $0x5]] }
  0x22   :  { %vm101_vm3 = vcmp.gt.s32.totalorder %v378_v11, 3  ;;  %vm118_vm4 = vcmp.gt.s32.totalorder %v378_v11, 4  ;;  %vm135_vm5 = vcmp.gt.s32.totalorder %v378_v11, 5  ;;  %vm152_vm6 = vcmp.gt.s32.totalorder %v378_v11, 6  ;;  %s233_s14 = sld [smem:[#allocation3 + $0x6]]  ;;  %s234_s15 = sld [smem:[#allocation3 + $0x7]] }
  0x23   :  { %v386_v20 = vsub.s32 0, %v78_v14  ;;  %v238_v35 = vsel %vm101_vm3, 1.0, %v323_v15  ;;  %v239_v42 = vsel %vm118_vm4, 1.0, %v323_v15  ;;  %v240_v49 = vsel %vm135_vm5, 1.0, %v323_v15  ;;  %s324_s16 = smov [#allocation8]  }
  0x24   :  { %v241_v56 = vsel %vm152_vm6, 1.0, %v323_v15  ;;  %vm169_vm7 = vcmp.gt.s32.totalorder %v378_v11, 7  ;;  %s215_s17 = sshll.u32 %s324_s16, 4  ;;  %s216_s17 = int_to_ptr.vmem [resolvable:$true] %s215_s17 }
  0x25   :  { %v49_v2 = vstv %s40_s8  ;;  %v54_v3 = vstv %s228_s9  ;;  %v80_v24 = vrot.slane %v236_v21, %v386_v20  ;;  %v97_v31 = vrot.slane %v237_v28, %v386_v20  ;;  %s291_s18 = scalar_lea.vmem %s216_s17, 256  ;;  %p296_p12 = scmp.lt.s32.totalorder %s216_s17, %s216_s17 }
  0x26   :  { %v50_v4 = vmul.f32 %v49_v2, %v48_v0  ;;  %v51_v5 = vstv %s230_s11  ;;  %v55_v6 = vmul.f32 %v54_v3, %v53_v1  ;;  %v372_v7 = vstv %s229_s10  ;;  %p292_p11 = scmp.ne.s32.totalorder %s216_s17, %s291_s18  ;;  %p297_p13 = scmp.lt.s32.totalorder %s291_s18, %s291_s18 }
  0x27   :  { %v62_v9 = vmul.f32 0.0, %v372_v7  ;;  %v114_v38 = vrot.slane %v238_v35, %v386_v20  ;;  %v131_v45 = vrot.slane %v239_v42, %v386_v20  ;;  %v148_v52 = vrot.slane %v240_v49, %v386_v20 }
  0x28   :  { %v52_v8 = vadd.f32 %v51_v5, %v50_v4  ;;  %v165_v59 = vrot.slane %v241_v56, %v386_v20  ;;  %v242_v63 = vsel %vm169_vm7, 1.0, %v323_v15  ;;  %v187_v5 = vstv %s231_s2  ;;  %p298_p0 = por %p297_p13, %p296_p12 }
  0x29   :  { %v182_v2 = vrot.slane %v242_v63, %v386_v20  ;;  %v201_v10 = vstv %s234_s15 }
  0x2a   :  { %v380_v12 = vadd.f32 %v55_v6, %v52_v8  ;;  %v199_v6 = vstv %s232_s13  ;;  %p299_p1 = pnand %p298_p0, %p292_p11 }
  0x2c   :  { %v63_v13 = vadd.f32 %v62_v9, %v380_v12  ;;  %v189_v9 = vstv %s233_s14 }
  0x2e   :  { %v64_v17 = vmax.f32 %v63_v13, 0.0 }
  0x30   :  { %v65_v18 = vmul.f32 %v235_v16, %v64_v17  ;;  %v70_v19 = vmul.f32 %v64_v17, %v372_v7 }
  0x32   :  { %66 = vst [vmem:[#allocation2] sm:$0x1] %v65_v18  ;;  %v72_v22 = vrot.slane %v70_v19, 7 }
  0x34   :  { %v74_v23 = vadd.f32 %v72_v22, %v380_v12 }
  0x36   :  { %v75_v25 = vmax.f32 %v74_v23, 0.0 }
  0x38   :  { %v82_v26 = vmul.f32 %v80_v24, %v75_v25  ;;  %v87_v27 = vmul.f32 %v75_v25, %v372_v7 }
  0x3a   :  { %83 = vst [vmem:[#allocation2] sm:$0x2] %v82_v26  ;;  %v89_v29 = vrot.slane %v87_v27, 7 }
  0x3c   :  { %v91_v30 = vadd.f32 %v89_v29, %v380_v12 }
  0x3e   :  { %v92_v32 = vmax.f32 %v91_v30, 0.0 }
  0x40   :  { %v99_v33 = vmul.f32 %v97_v31, %v92_v32  ;;  %v104_v34 = vmul.f32 %v92_v32, %v372_v7 }
  0x42   :  { %100 = vst [vmem:[#allocation2] sm:$0x4] %v99_v33  ;;  %v106_v36 = vrot.slane %v104_v34, 7 }
  0x44   :  { %v108_v37 = vadd.f32 %v106_v36, %v380_v12 }
  0x46   :  { %v109_v39 = vmax.f32 %v108_v37, 0.0 }
  0x48   :  { %v116_v40 = vmul.f32 %v114_v38, %v109_v39  ;;  %v121_v41 = vmul.f32 %v109_v39, %v372_v7 }
  0x4a   :  { %117 = vst [vmem:[#allocation2] sm:$0x8] %v116_v40  ;;  %v123_v43 = vrot.slane %v121_v41, 7 }
  0x4c   :  { %v125_v44 = vadd.f32 %v123_v43, %v380_v12 }
  0x4e   :  { %v126_v46 = vmax.f32 %v125_v44, 0.0 }
  0x50   :  { %v133_v47 = vmul.f32 %v131_v45, %v126_v46  ;;  %v138_v48 = vmul.f32 %v126_v46, %v372_v7 }
  0x52   :  { %134 = vst [vmem:[#allocation2] sm:$0x10] %v133_v47  ;;  %v140_v50 = vrot.slane %v138_v48, 7 }
  0x54   :  { %v142_v51 = vadd.f32 %v140_v50, %v380_v12 }
  0x56   :  { %v143_v53 = vmax.f32 %v142_v51, 0.0 }
  0x58   :  { %v150_v54 = vmul.f32 %v148_v52, %v143_v53  ;;  %v155_v55 = vmul.f32 %v143_v53, %v372_v7 }
  0x5a   :  { %151 = vst [vmem:[#allocation2] sm:$0x20] %v150_v54  ;;  %v157_v57 = vrot.slane %v155_v55, 7 }
  0x5c   :  { %v159_v58 = vadd.f32 %v157_v57, %v380_v12 }
  0x5e   :  { %v160_v60 = vmax.f32 %v159_v58, 0.0 }
  0x60   :  { %v167_v61 = vmul.f32 %v165_v59, %v160_v60  ;;  %v172_v62 = vmul.f32 %v160_v60, %v372_v7 }
  0x62   :  { %168 = vst [vmem:[#allocation2] sm:$0x40] %v167_v61  ;;  %v174_v0 = vrot.slane %v172_v62, 7 }
  0x64   :  { %v176_v1 = vadd.f32 %v174_v0, %v380_v12 }
  0x66   :  { %v177_v3 = vmax.f32 %v176_v1, 0.0 }
  0x68   :  { %v184_v4 = vmul.f32 %v182_v2, %v177_v3 }
  0x6a   :  { %185 = vst [vmem:[#allocation2] sm:$0x80] %v184_v4 }
  0x71   :  { %v186_v8 = vld [vmem:[#allocation2] sm:$0xff] }
  0x72   :  { %v188_v7 = vmul.f32 %v187_v5, %v186_v8  ;;  %v200_v11 = vmul.f32 %v199_v6, %v186_v8 }
  0x74   :  { %v190_v13 = vadd.f32 %v189_v9, %v188_v7  ;;  %v202_v14 = vadd.f32 %v201_v10, %v200_v11 }
  0x76   :  { %v243_v15 = vmul.f32 -1.442695, %v190_v13  ;;  %v244_v12 = vmul.f32 -1.442695, %v202_v14 }
  0x78   :  { %251 = vpow2.f32 %v243_v15 }
  0x79   :  { %253 = vpow2.f32 %v244_v12 }
  0x82   :  { %v252_v16 = vpop.eup %251 }
  0x83   :  { %v254_v17 = vpop.eup %253  ;;  %v194_v18 = vadd.f32 1.0, %v252_v16 }
  0x84   :  { %v206_v19 = vadd.f32 1.0, %v254_v17 }
  0x85   :  { %255 = vrcp.f32 %v194_v18 }
  0x86   :  { %257 = vrcp.f32 %v206_v19 }
  0x8f   :  { %v256_v20 = vpop.eup %255 }
  0x90   :  { %v258_v21 = vpop.eup %257  ;;  %197 = vst [vmem:[#allocation8] sm:$0xff] %v256_v20 }
  0x91   :  { %209 = vst [vmem:[#allocation8 + $0x8] sm:$0xff] %v258_v21 }
  0x92   :  { %302 = shalt.err (!%p299_p1)
}
  0x93   :  { %s303_s21 = scalar_lea.hbm %s432_s3, 256 }
  0x94   :  { %p304_p2 = scmp.ne.s32.totalorder %s432_s3, %s303_s21  ;;  %p307_p3 = scmp.lt.u32.totalorder %s303_s21, %s432_s3 }
  0x96   :  { %p309_p4 = pnand %p307_p3, %p304_p2 }
  0x98   :  { %312 = shalt.err (!%p309_p4)
}
  0x99   :  { %221 = dma.vmem_to_hbm [thread:$0]  %s216_s17, 256, %s432_s3, [#allocation5], %s321_s0, %s321_s0, %s322_s5  }
  0x9a   :  { %317 = dma.done.wait [#allocation5], 256  }
  0x9b   :  { %318 = vsyncadd [#allocation5], 4294967040 }
  0x9c   :  { %225 = vsyncpa [#allocation4], 1 }
  0x9d   :  { %226 = vsyncpa [#allocation5], 1 }
  0x9e   :  { %227 = vsyncpa [#allocation6], 1 }

</bundles_post_ra>
